<compile_context>
chip_gen: v7x
topology: tpu7x:2x2x1
jax: 0.10.0
libtpu: 0.0.40
codegen_flags: <defaults>
</compile_context>

<pallas_src>
import jax
import jax.numpy as jnp
from jax.experimental import pallas as pl
from jax.experimental.pallas import tpu as pltpu

OBS_DIM = 5
H1 = 512
H2 = 256
T = 40
T_PAD = 128  # lane-dense output slab (T rounded up to 128 lanes)


def _round_up(n, m):
    return ((n + m - 1) // m) * m


def mlp_kernel(x_ref, w1_ref, b1_ref, w2_ref, b2_ref, w3_ref, b3_ref, o_ref):
    # bf16 operands into the MXU, fp32 accumulation; bias/ReLU/tanh in fp32.
    x = x_ref[...].astype(jnp.bfloat16)
    h1 = jnp.dot(x, w1_ref[...], preferred_element_type=jnp.float32) + b1_ref[...]
    h1 = jnp.maximum(h1, 0.0).astype(jnp.bfloat16)
    h2 = jnp.dot(h1, w2_ref[...], preferred_element_type=jnp.float32) + b2_ref[...]
    h2 = jnp.maximum(h2, 0.0).astype(jnp.bfloat16)
    h3 = jnp.dot(h2, w3_ref[...], preferred_element_type=jnp.float32) + b3_ref[...]
    # Full 128-lane slab store (lanes T..127 carry zeros from the padded w3/b3).
    o_ref[...] = jnp.tanh(h3).astype(o_ref.dtype)


def mlp_direct_policy_forward(x, params, *, tb=None):
    """x: (B, OBS_DIM) float32 -> (B, T) float32."""
    w1, b1, w2, b2, w3, b3 = params
    B = x.shape[0]

    # Batch tile: multiple of 16 rows (bf16 sublane packing); cap at 256 so the
    # x/out tiles stay a few hundred KB and double-buffer comfortably.
    if tb is None:
        tb = min(256, _round_up(max(B, 1), 16))
    b_pad = _round_up(B, tb)
    if b_pad != B:
        x = jnp.pad(x, ((0, b_pad - B), (0, 0)))

    out = pl.pallas_call(
        mlp_kernel,
        out_shape=jax.ShapeDtypeStruct((b_pad, T_PAD), jnp.float32),
        grid_spec=pltpu.PrefetchScalarGridSpec(
            num_scalar_prefetch=0,
            grid=(b_pad // tb,),
            in_specs=[
                # x: tiled over batch
                pl.BlockSpec((tb, OBS_DIM), lambda i: (i, 0)),
                # weights / biases: constant block index -> resident across grid
                pl.BlockSpec((OBS_DIM, H1), lambda i: (0, 0)),
                pl.BlockSpec((1, H1), lambda i: (0, 0)),
                pl.BlockSpec((H1, H2), lambda i: (0, 0)),
                pl.BlockSpec((1, H2), lambda i: (0, 0)),
                pl.BlockSpec((H2, T_PAD), lambda i: (0, 0)),
                pl.BlockSpec((1, T_PAD), lambda i: (0, 0)),
            ],
            out_specs=pl.BlockSpec((tb, T_PAD), lambda i: (i, 0)),
        ),
        compiler_params=pltpu.CompilerParams(
            dimension_semantics=("parallel",)),
    )(x, w1, b1, w2, b2, w3, b3)

    return out[:B, :T]


def init_params(key):
    """torch.nn.Linear-style U(-1/sqrt(fan_in), 1/sqrt(fan_in)) init.

    Weights are cast to bf16 (storage + MXU operand dtype); biases stay fp32.
    w3/b3 are zero-padded from T=40 to T_PAD=128 output lanes.
    """
    def linear(key, fan_in, fan_out):
        kw, kb = jax.random.split(key)
        bound = 1.0 / jnp.sqrt(fan_in)
        w = jax.random.uniform(kw, (fan_in, fan_out), jnp.float32, -bound, bound)
        b = jax.random.uniform(kb, (1, fan_out), jnp.float32, -bound, bound)
        return w, b

    k1, k2, k3 = jax.random.split(key, 3)
    w1, b1 = linear(k1, OBS_DIM, H1)
    w2, b2 = linear(k2, H1, H2)
    w3, b3 = linear(k3, H2, T)

    # Lane-dense padding of the last layer to 128 outputs (zeros past T).
    w3p = jnp.pad(w3, ((0, 0), (0, T_PAD - T)))
    b3p = jnp.pad(b3, ((0, 0), (0, T_PAD - T)))

    return (
        w1.astype(jnp.bfloat16), b1,
        w2.astype(jnp.bfloat16), b2,
        w3p.astype(jnp.bfloat16), b3p,
    )


def reference_forward(x, params):
    """Pure-JAX reference using the same mixed-precision recipe."""
    w1, b1, w2, b2, w3, b3 = params
    h = jnp.dot(x.astype(jnp.bfloat16), w1, preferred_element_type=jnp.float32) + b1
    h = jnp.maximum(h, 0.0).astype(jnp.bfloat16)
    h = jnp.dot(h, w2, preferred_element_type=jnp.float32) + b2
    h = jnp.maximum(h, 0.0).astype(jnp.bfloat16)
    h = jnp.dot(h, w3, preferred_element_type=jnp.float32) + b3
    return jnp.tanh(h)[:, :T]


if __name__ == "__main__":
    key = jax.random.PRNGKey(0)
    kp, kx = jax.random.split(key)
    params = init_params(kp)

    B = 8  # small batch of observations
    x = jax.random.normal(kx, (B, OBS_DIM), jnp.float32)

    out = mlp_direct_policy_forward(x, params)
    out = jax.block_until_ready(out)

    ref = reference_forward(x, params)
    assert out.shape == (B, T)
    assert jnp.allclose(out, ref, atol=2e-3, rtol=2e-3), (
        float(jnp.max(jnp.abs(out - ref))))

    print("KERNEL_OK")
</pallas_src>

<mosaic_0001>
module attributes {stable_mosaic.version = 11 : i64} {
  func.func @mlp_kernel(%arg0: i32, %arg1: memref<16x5xf32, #tpu.memory_space<vmem>>, %arg2: memref<5x512xbf16, #tpu.memory_space<vmem>>, %arg3: memref<1x512xf32, #tpu.memory_space<vmem>>, %arg4: memref<512x256xbf16, #tpu.memory_space<vmem>>, %arg5: memref<1x256xf32, #tpu.memory_space<vmem>>, %arg6: memref<256x128xbf16, #tpu.memory_space<vmem>>, %arg7: memref<1x128xf32, #tpu.memory_space<vmem>>, %arg8: memref<16x128xf32, #tpu.memory_space<vmem>>) attributes {dimension_semantics = [#tpu.dimension_semantics<parallel>], iteration_bounds = array<i64: 1>, scalar_prefetch = 0 : i64, scratch_operands = 0 : i64, tpu.core_type = #tpu.core_type<tc>, window_params = [{transform_indices = @transform_0, window_bounds = array<i64: 16, 5>}, {pipeline_mode = #tpu.pipeline_mode<synchronous>, transform_indices = @transform_1, window_bounds = array<i64: 5, 512>}, {pipeline_mode = #tpu.pipeline_mode<synchronous>, transform_indices = @transform_2, window_bounds = array<i64: 1, 512>}, {pipeline_mode = #tpu.pipeline_mode<synchronous>, transform_indices = @transform_3, window_bounds = array<i64: 512, 256>}, {pipeline_mode = #tpu.pipeline_mode<synchronous>, transform_indices = @transform_4, window_bounds = array<i64: 1, 256>}, {pipeline_mode = #tpu.pipeline_mode<synchronous>, transform_indices = @transform_5, window_bounds = array<i64: 256, 128>}, {pipeline_mode = #tpu.pipeline_mode<synchronous>, transform_indices = @transform_6, window_bounds = array<i64: 1, 128>}, {transform_indices = @transform_7, window_bounds = array<i64: 16, 128>}]} {
    %c0 = arith.constant 0 : index
    %c0_0 = arith.constant 0 : index
    %0 = vector.load %arg1[%c0, %c0_0] : memref<16x5xf32, #tpu.memory_space<vmem>>, vector<16x5xf32>
    %1 = arith.truncf %0 : vector<16x5xf32> to vector<16x5xbf16>
    %c0_1 = arith.constant 0 : index
    %c0_2 = arith.constant 0 : index
    %2 = vector.load %arg2[%c0_1, %c0_2] : memref<5x512xbf16, #tpu.memory_space<vmem>>, vector<5x512xbf16>
    %cst = arith.constant dense<0.000000e+00> : vector<16x512xf32>
    %3 = tpu.matmul %1, %2, %cst {dimension_numbers = #tpu.dot_dimension_numbers<[1], [0], [0], [1], [0, 0, 1, 1], [], []>} : vector<16x5xbf16>, vector<5x512xbf16>, vector<16x512xf32> -> vector<16x512xf32>
    %c0_3 = arith.constant 0 : index
    %c0_4 = arith.constant 0 : index
    %4 = vector.load %arg3[%c0_3, %c0_4] : memref<1x512xf32, #tpu.memory_space<vmem>>, vector<1x512xf32>
    %5 = vector.broadcast %4 : vector<1x512xf32> to vector<16x512xf32>
    %6 = arith.addf %3, %5 : vector<16x512xf32>
    %cst_5 = arith.constant 0.000000e+00 : f32
    %7 = vector.broadcast %cst_5 : f32 to vector<16x512xf32>
    %8 = arith.maximumf %6, %7 : vector<16x512xf32>
    %9 = arith.truncf %8 : vector<16x512xf32> to vector<16x512xbf16>
    %c0_6 = arith.constant 0 : index
    %c0_7 = arith.constant 0 : index
    %10 = vector.load %arg4[%c0_6, %c0_7] : memref<512x256xbf16, #tpu.memory_space<vmem>>, vector<512x256xbf16>
    %cst_8 = arith.constant dense<0.000000e+00> : vector<16x256xf32>
    %11 = tpu.matmul %9, %10, %cst_8 {dimension_numbers = #tpu.dot_dimension_numbers<[1], [0], [0], [1], [0, 0, 1, 1], [], []>} : vector<16x512xbf16>, vector<512x256xbf16>, vector<16x256xf32> -> vector<16x256xf32>
    %c0_9 = arith.constant 0 : index
    %c0_10 = arith.constant 0 : index
    %12 = vector.load %arg5[%c0_9, %c0_10] : memref<1x256xf32, #tpu.memory_space<vmem>>, vector<1x256xf32>
    %13 = vector.broadcast %12 : vector<1x256xf32> to vector<16x256xf32>
    %14 = arith.addf %11, %13 : vector<16x256xf32>
    %cst_11 = arith.constant 0.000000e+00 : f32
    %15 = vector.broadcast %cst_11 : f32 to vector<16x256xf32>
    %16 = arith.maximumf %14, %15 : vector<16x256xf32>
    %17 = arith.truncf %16 : vector<16x256xf32> to vector<16x256xbf16>
    %c0_12 = arith.constant 0 : index
    %c0_13 = arith.constant 0 : index
    %18 = vector.load %arg6[%c0_12, %c0_13] : memref<256x128xbf16, #tpu.memory_space<vmem>>, vector<256x128xbf16>
    %cst_14 = arith.constant dense<0.000000e+00> : vector<16x128xf32>
    %19 = tpu.matmul %17, %18, %cst_14 {dimension_numbers = #tpu.dot_dimension_numbers<[1], [0], [0], [1], [0, 0, 1, 1], [], []>} : vector<16x256xbf16>, vector<256x128xbf16>, vector<16x128xf32> -> vector<16x128xf32>
    %c0_15 = arith.constant 0 : index
    %c0_16 = arith.constant 0 : index
    %20 = vector.load %arg7[%c0_15, %c0_16] : memref<1x128xf32, #tpu.memory_space<vmem>>, vector<1x128xf32>
    %21 = vector.broadcast %20 : vector<1x128xf32> to vector<16x128xf32>
    %22 = arith.addf %19, %21 : vector<16x128xf32>
    %23 = math.tanh %22 : vector<16x128xf32>
    %c0_17 = arith.constant 0 : index
    %c0_18 = arith.constant 0 : index
    %24 = vector.load %arg8[%c0_17, %c0_18] : memref<16x128xf32, #tpu.memory_space<vmem>>, vector<16x128xf32>
    tpu.vector_store %arg8[%c0_17, %c0_18], %23 {strides = array<i32>} : memref<16x128xf32, #tpu.memory_space<vmem>>, vector<16x128xf32>,
    return
  }
  func.func @transform_0(%arg0: i32) -> (i32, i32) {
    %c0_i32 = arith.constant 0 : i32
    %c0_i32_0 = arith.constant 0 : i32
    return %arg0, %c0_i32 : i32, i32
  }
  func.func @transform_1(%arg0: i32) -> (i32, i32) {
    %c0_i32 = arith.constant 0 : i32
    %c0_i32_0 = arith.constant 0 : i32
    %c0_i32_1 = arith.constant 0 : i32
    return %c0_i32, %c0_i32_0 : i32, i32
  }
  func.func @transform_2(%arg0: i32) -> (i32, i32) {
    %c0_i32 = arith.constant 0 : i32
    %c0_i32_0 = arith.constant 0 : i32
    %c0_i32_1 = arith.constant 0 : i32
    return %c0_i32, %c0_i32_0 : i32, i32
  }
  func.func @transform_3(%arg0: i32) -> (i32, i32) {
    %c0_i32 = arith.constant 0 : i32
    %c0_i32_0 = arith.constant 0 : i32
    %c0_i32_1 = arith.constant 0 : i32
    return %c0_i32, %c0_i32_0 : i32, i32
  }
  func.func @transform_4(%arg0: i32) -> (i32, i32) {
    %c0_i32 = arith.constant 0 : i32
    %c0_i32_0 = arith.constant 0 : i32
    %c0_i32_1 = arith.constant 0 : i32
    return %c0_i32, %c0_i32_0 : i32, i32
  }
  func.func @transform_5(%arg0: i32) -> (i32, i32) {
    %c0_i32 = arith.constant 0 : i32
    %c0_i32_0 = arith.constant 0 : i32
    %c0_i32_1 = arith.constant 0 : i32
    return %c0_i32, %c0_i32_0 : i32, i32
  }
  func.func @transform_6(%arg0: i32) -> (i32, i32) {
    %c0_i32 = arith.constant 0 : i32
    %c0_i32_0 = arith.constant 0 : i32
    %c0_i32_1 = arith.constant 0 : i32
    return %c0_i32, %c0_i32_0 : i32, i32
  }
  func.func @transform_7(%arg0: i32) -> (i32, i32) {
    %c0_i32 = arith.constant 0 : i32
    %c0_i32_0 = arith.constant 0 : i32
    return %arg0, %c0_i32 : i32, i32
  }
}

</mosaic_0001>

<bundles_post_ra>
// kernel: tpu_custom_call.1
= control target key start
LH: loop header
LB: loop body
LE: loop exit
PB: predicated region body
PF: predicated region fallthrough
CT: control target
= control target key end

     0   :  { %12 = vsyncpa [#allocation3], 0  ;;  %s1343_s0 = inlined_call_operand.vmem [shape: f32[16,5], index: 0, kind: input, shape index: {}]   ;;  %s1344_s1 = inlined_call_operand.vmem [shape: bf16[5,512], index: 1, kind: input, shape index: {}]   ;;  %s1345_s2 = inlined_call_operand.vmem [shape: f32[1,512], index: 2, kind: input, shape index: {}]   ;;  %s1346_s3 = inlined_call_operand.hbm [shape: bf16[512,256], index: 3, kind: input, shape index: {}]   ;;  %s1347_s4 = inlined_call_operand.vmem [shape: f32[1,256], index: 4, kind: input, shape index: {}]   ;;  %s1348_s5 = inlined_call_operand.hbm [shape: bf16[256,128], index: 5, kind: input, shape index: {}]   ;;  %s1349_s6 = inlined_call_operand.vmem [shape: f32[1,128], index: 6, kind: input, shape index: {}]   ;;  %s1350_s7 = inlined_call_operand.hbm [shape: f32[16,128], index: 7, kind: output, shape index: {}]  }
   0x1   :  { %13 = vsyncpa [#allocation6], 0 }
   0x2   :  { %14 = vsyncpa [#allocation4], 0  ;;  %s1215_s24 = smov [#allocation2]   ;;  %s1143_s28 = scalar_lea.hbm %s1346_s3, 8192 }
   0x3   :  { %s26_s25 = sshll.u32 %s1215_s24, 4  ;;  %p1144_p0 = scmp.ne.s32.totalorder %s1346_s3, %s1143_s28  ;;  %s27_s25 = int_to_ptr.vmem [resolvable:$true] %s26_s25 }
   0x4   :  { %p1147_p1 = scmp.lt.u32.totalorder %s1143_s28, %s1346_s3 }
   0x6   :  { %p1149_p2 = pnand %p1147_p1, %p1144_p0 }
   0x8   :  { %1152 = shalt.err (!%p1149_p2)
}
   0x9   :  { %s1153_s10 = scalar_lea.vmem %s27_s25, 8192  ;;  %p1158_p4 = scmp.lt.s32.totalorder %s27_s25, %s27_s25 }
   0xa   :  { %p1154_p3 = scmp.ne.s32.totalorder %s27_s25, %s1153_s10  ;;  %p1159_p5 = scmp.lt.s32.totalorder %s1153_s10, %s1153_s10 }
   0xc   :  { %p1160_p6 = por %p1159_p5, %p1158_p4 }
   0xe   :  { %p1161_p7 = pnand %p1160_p6, %p1154_p3 }
  0x10   :  { %1164 = shalt.err (!%p1161_p7)
}
  0x11   :  { %s1216_s11 = smov 128   ;;  %s1217_s12 = smov 8  }
  0x12   :  { %32 = dma.hbm_to_vmem [thread:$0]  %s1346_s3, 8192, %s27_s25, [#allocation3], %s1216_s11, %s1216_s11, %s1217_s12  }
  0x13   :  { %s1218_s15 = smov [#allocation5]   ;;  %s1165_s19 = scalar_lea.hbm %s1348_s5, 2048 }
  0x14   :  { %s40_s16 = sshll.u32 %s1218_s15, 4  ;;  %p1166_p8 = scmp.ne.s32.totalorder %s1348_s5, %s1165_s19  ;;  %s41_s16 = int_to_ptr.vmem [resolvable:$true] %s40_s16 }
  0x15   :  { %p1169_p9 = scmp.lt.u32.totalorder %s1165_s19, %s1348_s5 }
  0x17   :  { %p1171_p10 = pnand %p1169_p9, %p1166_p8 }
  0x19   :  { %1174 = shalt.err (!%p1171_p10)
}
  0x1a   :  { %s1175_s24 = scalar_lea.vmem %s41_s16, 2048  ;;  %p1180_p12 = scmp.lt.s32.totalorder %s41_s16, %s41_s16 }
  0x1b   :  { %p1176_p11 = scmp.ne.s32.totalorder %s41_s16, %s1175_s24  ;;  %p1181_p13 = scmp.lt.s32.totalorder %s1175_s24, %s1175_s24 }
  0x1d   :  { %p1182_p0 = por %p1181_p13, %p1180_p12 }
  0x1f   :  { %p1183_p1 = pnand %p1182_p0, %p1176_p11 }
  0x21   :  { %1186 = shalt.err (!%p1183_p1)
}
  0x22   :  { %s1219_s3 = smov 64   ;;  %s1220_s25 = smov 4  }
  0x23   :  { %46 = dma.hbm_to_vmem [thread:$0]  %s1348_s5, 2048, %s41_s16, [#allocation6], %s1219_s3, %s1219_s3, %s1220_s25  }
  0x24   :  { %1209 = dma.done.wait [#allocation3], 8192  }
  0x25   :  { %1210 = vsyncadd [#allocation3], 4294959104 }
  0x26   :  { %1211 = dma.done.wait [#allocation6], 2048  }
  0x27   :  { %1212 = vsyncadd [#allocation6], 4294965248  ;;  %vm97_vm0 = vcmask 1041408   ;;  %v1221_v0 = vmov 0   ;;  %vm98_vm1 = vcmask 1042432   ;;  %v1222_v1 = vmov 65535  }
  0x28   :  { %145 = vmatprep.mubr.bf16.mxu0 %v1221_v0  ;;  %v99_v2 = vsel %vm97_vm0, 4294967295, %v1222_v1  ;;  %v59_v3 = vld [vmem:[%s1344_s1] sm:$0x77]  ;;  %v57_v6 = vld [vmem:[%s1343_s0 + $0x8] sm:$0xff]  ;;  %v1027_v12 = vld [vmem:[#allocation2 + $0x4] ss:$8 sps:$4 sm:$0xff]  }
  0x29   :  { %v100_v4 = vsel %vm98_vm1, %v99_v2, 0  ;;  %v56_v5 = vld [vmem:[%s1343_s0] sm:$0xff]  ;;  %v898_v7 = vcombine.high %v59_v3, %v59_v3  ;;  %v897_v8 = vcombine.low %v59_v3, %v59_v3  ;;  %v60_v9 = vld [vmem:[%s1344_s1 + $0x8] sm:$0x77]  ;;  %v1029_v13 = vld [vmem:[#allocation2] ss:$8 sps:$4 sm:$0xff]   ;;  %607 = vmatprep.subr.bf16.mxu1 %v1027_v12 }
  0x2a   :  { %v899_v10 = vcombine.low %v60_v9, %v60_v9  ;;  %v900_v11 = vcombine.high %v60_v9, %v60_v9  ;;  %v1030_v16 = vld [vmem:[#allocation2 + $0x14] ss:$8 sps:$4 sm:$0xff]   ;;  %v58_v18 = vpack.c.bf16 %v57_v6, %v56_v5  ;;  %608 = vmatpush1.bf16.msra.mxu1 %v1029_v13  ;;  %v1032_v19 = vld [vmem:[#allocation2 + $0x10] ss:$8 sps:$4 sm:$0xff]   ;;  %vm93_vm2 = vcmask 39936   ;;  %s1223_s16 = smov [#allocation7]  }
  0x2b   :  { %v105_v14 = vand.u32 %v898_v7, %v100_v4  ;;  %v102_v15 = vand.u32 %v897_v8, %v100_v4  ;;  %609 = vmatprep.subr.bf16.mxu1 %v1030_v16  ;;  %v1033_v21 = vld [vmem:[#allocation2 + $0x24] ss:$8 sps:$4 sm:$0xff]   ;;  %v1038_v23 = vld [vmem:[#allocation2 + $0x20] ss:$8 sps:$4 sm:$0xff]   ;;  %v1039_v24 = vld [vmem:[#allocation2 + $0x34] ss:$8 sps:$4 sm:$0xff]  }
  0x2c   :  { %v111_v17 = vand.u32 %v900_v11, %v100_v4  ;;  %v108_v20 = vand.u32 %v899_v10, %v100_v4  ;;  %v1037_v22 = vld [vmem:[#allocation2 + $0x104] ss:$8 sps:$4 sm:$0xff]   ;;  %v1044_v25 = vld [vmem:[#allocation2 + $0x30] ss:$8 sps:$4 sm:$0xff]   ;;  %v1035_v26 = vld [vmem:[#allocation2 + $0x100] ss:$8 sps:$4 sm:$0xff]  }
  0x2d   :  { %113 = vmatprep.subr.bf16.mxu0 %v105_v14  ;;  %v1045_v27 = vld [vmem:[#allocation2 + $0x44] ss:$8 sps:$4 sm:$0xff]   ;;  %v1043_v28 = vld [vmem:[#allocation2 + $0x114] ss:$8 sps:$4 sm:$0xff]   ;;  %v1041_v29 = vld [vmem:[#allocation2 + $0x110] ss:$8 sps:$4 sm:$0xff]  }
  0x2e   :  { %114 = vmatpush1.bf16.msra.mxu0 %v102_v15  ;;  %610 = vmatpush1.bf16.msra.mxu1 %v1032_v19  ;;  %v1050_v30 = vld [vmem:[#allocation2 + $0x40] ss:$8 sps:$4 sm:$0xff]   ;;  %v1051_v31 = vld [vmem:[#allocation2 + $0x54] ss:$8 sps:$4 sm:$0xff]   ;;  %v1049_v32 = vld [vmem:[#allocation2 + $0x124] ss:$8 sps:$4 sm:$0xff]  }
  0x2f   :  { %156 = vmatprep.subr.bf16.mxu0 %v111_v17  ;;  %611 = vmatprep.subr.bf16.mxu1 %v1033_v21  ;;  %v1056_v33 = vld [vmem:[#allocation2 + $0x50] ss:$8 sps:$4 sm:$0xff]   ;;  %v1047_v34 = vld [vmem:[#allocation2 + $0x120] ss:$8 sps:$4 sm:$0xff]   ;;  %v1057_v35 = vld [vmem:[#allocation2 + $0x64] ss:$8 sps:$4 sm:$0xff]  }
  0x30   :  { %v1055_v36 = vld [vmem:[#allocation2 + $0x134] ss:$8 sps:$4 sm:$0xff]   ;;  %v1053_v37 = vld [vmem:[#allocation2 + $0x130] ss:$8 sps:$4 sm:$0xff]   ;;  %v1062_v38 = vld [vmem:[#allocation2 + $0x60] ss:$8 sps:$4 sm:$0xff]  }
  0x31   :  { %901 = vmatmul.mubr.msk.bf16.vlgmr.msra.gmra.mrb[0].mxu0 %vm93_vm2, %v58_v18  ;;  %v1063_v39 = vld [vmem:[#allocation2 + $0x74] ss:$8 sps:$4 sm:$0xff]   ;;  %v1061_v40 = vld [vmem:[#allocation2 + $0x144] ss:$8 sps:$4 sm:$0xff]   ;;  %v1068_v41 = vld [vmem:[#allocation2 + $0x70] ss:$8 sps:$4 sm:$0xff]  }
  0x32   :  { %157 = vmatpush1.bf16.msra.mxu0 %v108_v20  ;;  %188 = vmatprep.mubr.bf16.mxu0 %v1221_v0  ;;  %v1059_v42 = vld [vmem:[#allocation2 + $0x140] ss:$8 sps:$4 sm:$0xff]   ;;  %v1069_v43 = vld [vmem:[#allocation2 + $0x84] ss:$8 sps:$4 sm:$0xff]   ;;  %v1067_v44 = vld [vmem:[#allocation2 + $0x154] ss:$8 sps:$4 sm:$0xff]  }
  0x33   :  { %650 = vmatprep.subr.bf16.mxu0 %v1037_v22  ;;  %612 = vmatpush1.bf16.msra.mxu1 %v1038_v23  ;;  %v1065_v45 = vld [vmem:[#allocation2 + $0x150] ss:$8 sps:$4 sm:$0xff]   ;;  %v1074_v46 = vld [vmem:[#allocation2 + $0x80] ss:$8 sps:$4 sm:$0xff]   ;;  %v1075_v47 = vld [vmem:[#allocation2 + $0x94] ss:$8 sps:$4 sm:$0xff]  }
  0x34   :  { %613 = vmatprep.subr.bf16.mxu1 %v1039_v24  ;;  %v1073_v48 = vld [vmem:[#allocation2 + $0x164] ss:$8 sps:$4 sm:$0xff]   ;;  %v1080_v49 = vld [vmem:[#allocation2 + $0x90] ss:$8 sps:$4 sm:$0xff]   ;;  %v1071_v50 = vld [vmem:[#allocation2 + $0x160] ss:$8 sps:$4 sm:$0xff]  }
  0x35   :  { %v1081_v51 = vld [vmem:[#allocation2 + $0xa4] ss:$8 sps:$4 sm:$0xff]   ;;  %v1079_v52 = vld [vmem:[#allocation2 + $0x174] ss:$8 sps:$4 sm:$0xff]   ;;  %v1086_v53 = vld [vmem:[#allocation2 + $0xa0] ss:$8 sps:$4 sm:$0xff]  }
  0x36   :  { %v1077_v54 = vld [vmem:[#allocation2 + $0x170] ss:$8 sps:$4 sm:$0xff]   ;;  %v1087_v55 = vld [vmem:[#allocation2 + $0xb4] ss:$8 sps:$4 sm:$0xff]   ;;  %v1085_v56 = vld [vmem:[#allocation2 + $0x184] ss:$8 sps:$4 sm:$0xff]  }
  0x37   :  { %614 = vmatpush1.bf16.msra.mxu1 %v1044_v25  ;;  %v1092_v57 = vld [vmem:[#allocation2 + $0xb0] ss:$8 sps:$4 sm:$0xff]   ;;  %v1083_v58 = vld [vmem:[#allocation2 + $0x180] ss:$8 sps:$4 sm:$0xff]   ;;  %v1093_v59 = vld [vmem:[#allocation2 + $0xc4] ss:$8 sps:$4 sm:$0xff]  }
  0x38   :  { %615 = vmatprep.subr.bf16.mxu1 %v1045_v27  ;;  %v1091_v60 = vld [vmem:[#allocation2 + $0x194] ss:$8 sps:$4 sm:$0xff]   ;;  %v1098_v61 = vld [vmem:[#allocation2 + $0xc0] ss:$8 sps:$4 sm:$0xff]   ;;  %v1089_v62 = vld [vmem:[#allocation2 + $0x190] ss:$8 sps:$4 sm:$0xff]  }
  0x39   :  { %902 = vmatmul.mubr.msk.bf16.vlgmr.msra.gmra.mrb[4].mxu0 %vm93_vm2, %v58_v18  ;;  %v1099_v63 = vld [vmem:[#allocation2 + $0xd4] ss:$8 sps:$4 sm:$0xff]   ;;  %v1097_v0 = vld [vmem:[#allocation2 + $0x1a4] ss:$8 sps:$4 sm:$0xff]   ;;  %v1095_v1 = vld [vmem:[#allocation2 + $0x1a0] ss:$8 sps:$4 sm:$0xff]   ;;  %v63_v18 = vlaneseq }
  0x3a   :  { %651 = vmatpush1.bf16.msra.mxu0 %v1035_v26  ;;  %v1103_v2 = vld [vmem:[#allocation2 + $0x1b4] ss:$8 sps:$4 sm:$0xff]   ;;  %v1101_v3 = vld [vmem:[#allocation2 + $0x1b0] ss:$8 sps:$4 sm:$0xff]   ;;  %v1105_v5 = vld [vmem:[#allocation2 + $0xe4] ss:$8 sps:$4 sm:$0xff]  }
  0x3b   :  { %652 = vmatprep.subr.bf16.mxu0 %v1043_v28  ;;  %616 = vmatpush1.bf16.msra.mxu1 %v1050_v30  ;;  %v1104_v4 = vld [vmem:[#allocation2 + $0xd0] ss:$8 sps:$4 sm:$0xff]   ;;  %v1109_v6 = vld [vmem:[#allocation2 + $0x1c4] ss:$8 sps:$4 sm:$0xff]   ;;  %v1107_v7 = vld [vmem:[#allocation2 + $0x1c0] ss:$8 sps:$4 sm:$0xff]  }
  0x3c   :  { %617 = vmatprep.subr.bf16.mxu1 %v1051_v31  ;;  %v1110_v8 = vld [vmem:[#allocation2 + $0xe0] ss:$8 sps:$4 sm:$0xff]   ;;  %v1111_v9 = vld [vmem:[#allocation2 + $0xf4] ss:$8 sps:$4 sm:$0xff]   ;;  %v1113_v11 = vld [vmem:[#allocation2 + $0x1d0] ss:$8 sps:$4 sm:$0xff]  }
  0x3d   :  { %v1115_v10 = vld [vmem:[#allocation2 + $0x1d4] ss:$8 sps:$4 sm:$0xff]   ;;  %v1116_v12 = vld [vmem:[#allocation2 + $0xf0] ss:$8 sps:$4 sm:$0xff]   ;;  %v1119_v13 = vld [vmem:[#allocation2 + $0x1e4] ss:$8 sps:$4 sm:$0xff]  }
  0x3e   :  { %653 = vmatpush1.bf16.msra.mxu0 %v1041_v29  ;;  %v1117_v14 = vld [vmem:[#allocation2 + $0x1e0] ss:$8 sps:$4 sm:$0xff]   ;;  %v1122_v15 = vld [vmem:[#allocation2 + $0x1f4] ss:$8 sps:$4 sm:$0xff]   ;;  %v1120_v16 = vld [vmem:[#allocation2 + $0x1f0] ss:$8 sps:$4 sm:$0xff]  }
  0x3f   :  { %654 = vmatprep.subr.bf16.mxu0 %v1049_v32  ;;  %618 = vmatpush1.bf16.msra.mxu1 %v1056_v33  ;;  %v1123_v17 = vld [vmem:[#allocation5 + $0x40] sm:$0xff]   ;;  %v1305_v19 = vshrl.u32 %v63_v18, 7  ;;  %v61_v21 = vld [vmem:[%s1345_s2] sm:$0xf]  ;;  %s884_s17 = sshll.u32 %s1223_s16, 4  ;;  %s885_s17 = int_to_ptr.vmem [resolvable:$true] %s884_s17 }
  0x40   :  { %619 = vmatprep.subr.bf16.mxu1 %v1057_v35  ;;  %s1187_s18 = scalar_lea.vmem %s885_s17, 256  ;;  %p1192_p3 = scmp.lt.s32.totalorder %s885_s17, %s885_s17 }
  0x41   :  { %v65_v20 = vsub.s32 0, %v1305_v19  ;;  %v69_v22 = vsub.s32 1, %v1305_v19  ;;  %v73_v28 = vsub.s32 2, %v1305_v19  ;;  %v77_v31 = vsub.s32 3, %v1305_v19  ;;  %p1188_p2 = scmp.ne.s32.totalorder %s885_s17, %s1187_s18  ;;  %p1193_p4 = scmp.lt.s32.totalorder %s1187_s18, %s1187_s18 }
  0x42   :  { %655 = vmatpush1.bf16.msra.mxu0 %v1047_v34 }
  0x43   :  { %656 = vmatprep.subr.bf16.mxu0 %v1055_v36  ;;  %620 = vmatpush1.bf16.msra.mxu1 %v1062_v38  ;;  %v66_v23 = vrot.slane %v61_v21, %v65_v20  ;;  %v70_v24 = vrot.slane %v61_v21, %v69_v22  ;;  %p1194_p5 = por %p1193_p4, %p1192_p3 }
  0x44   :  { %621 = vmatprep.subr.bf16.mxu1 %v1063_v39 }
  0x45   :  { %p1195_p6 = pnand %p1194_p5, %p1188_p2 }
  0x46   :  { %657 = vmatpush1.bf16.msra.mxu0 %v1053_v37  ;;  %v74_v37 = vrot.slane %v61_v21, %v73_v28 }
  0x47   :  { %658 = vmatprep.subr.bf16.mxu0 %v1061_v40  ;;  %622 = vmatpush1.bf16.msra.mxu1 %v1068_v41  ;;  %v78_v40 = vrot.slane %v61_v21, %v77_v31 }
  0x48   :  { %623 = vmatprep.subr.bf16.mxu1 %v1069_v43 }
  0x4a   :  { %659 = vmatpush1.bf16.msra.mxu0 %v1059_v42 }
  0x4b   :  { %660 = vmatprep.subr.bf16.mxu0 %v1067_v44  ;;  %624 = vmatpush1.bf16.msra.mxu1 %v1074_v46  ;;  %v1124_v44 = vld [vmem:[#allocation5] sm:$0xff]  }
  0x4c   :  { %625 = vmatprep.subr.bf16.mxu1 %v1075_v47  ;;  %v1125_v47 = vld [vmem:[#allocation5 + $0x48] sm:$0xff]  }
  0x4e   :  { %661 = vmatpush1.bf16.msra.mxu0 %v1065_v45 }
  0x4f   :  { %662 = vmatprep.subr.bf16.mxu0 %v1073_v48  ;;  %626 = vmatpush1.bf16.msra.mxu1 %v1080_v49 }
  0x50   :  { %627 = vmatprep.subr.bf16.mxu1 %v1081_v51 }
  0x52   :  { %663 = vmatpush1.bf16.msra.mxu0 %v1071_v50 }
  0x53   :  { %664 = vmatprep.subr.bf16.mxu0 %v1079_v52  ;;  %628 = vmatpush1.bf16.msra.mxu1 %v1086_v53  ;;  %v1126_v53 = vld [vmem:[#allocation5 + $0x8] sm:$0xff]  }
  0x54   :  { %629 = vmatprep.subr.bf16.mxu1 %v1087_v55 }
  0x56   :  { %665 = vmatpush1.bf16.msra.mxu0 %v1077_v54 }
  0x57   :  { %666 = vmatprep.subr.bf16.mxu0 %v1085_v56  ;;  %630 = vmatpush1.bf16.msra.mxu1 %v1092_v57  ;;  %v1127_v56 = vld [vmem:[#allocation5 + $0x50] sm:$0xff]  }
  0x58   :  { %631 = vmatprep.subr.bf16.mxu1 %v1093_v59 }
  0x5a   :  { %667 = vmatpush1.bf16.msra.mxu0 %v1083_v58 }
  0x5b   :  { %668 = vmatprep.subr.bf16.mxu0 %v1091_v60  ;;  %632 = vmatpush1.bf16.msra.mxu1 %v1098_v61  ;;  %v1128_v61 = vld [vmem:[#allocation5 + $0x10] sm:$0xff]  }
  0x5c   :  { %633 = vmatprep.subr.bf16.mxu1 %v1099_v63  ;;  %v1130_v63 = vld [vmem:[#allocation5 + $0x18] sm:$0xff]  }
  0x5e   :  { %669 = vmatpush1.bf16.msra.mxu0 %v1089_v62  ;;  %v1129_v62 = vld [vmem:[#allocation5 + $0x58] sm:$0xff]  }
  0x5f   :  { %670 = vmatprep.subr.bf16.mxu0 %v1097_v0  ;;  %634 = vmatpush1.bf16.msra.mxu1 %v1104_v4  ;;  %v1131_v0 = vld [vmem:[#allocation5 + $0x60] sm:$0xff]   ;;  %v1135_v4 = vld [vmem:[#allocation5 + $0x70] sm:$0xff]  }
  0x60   :  { %635 = vmatprep.subr.bf16.mxu1 %v1105_v5  ;;  %v1136_v5 = vld [vmem:[#allocation5 + $0x30] sm:$0xff]  }
  0x62   :  { %671 = vmatpush1.bf16.msra.mxu0 %v1095_v1  ;;  %v1132_v1 = vld [vmem:[#allocation5 + $0x20] sm:$0xff]  }
  0x63   :  { %672 = vmatprep.subr.bf16.mxu0 %v1103_v2  ;;  %636 = vmatpush1.bf16.msra.mxu1 %v1110_v8  ;;  %v1133_v2 = vld [vmem:[#allocation5 + $0x68] sm:$0xff]   ;;  %v275_v8 = vld [vmem:[%s1347_s4] sm:$0x3] }
  0x64   :  { %637 = vmatprep.subr.bf16.mxu1 %v1111_v9 }
  0x66   :  { %673 = vmatpush1.bf16.msra.mxu0 %v1101_v3  ;;  %v1134_v3 = vld [vmem:[#allocation5 + $0x28] sm:$0xff]  }
  0x67   :  { %674 = vmatprep.subr.bf16.mxu0 %v1109_v6  ;;  %638 = vmatpush1.bf16.msra.mxu1 %v1116_v12  ;;  %v1137_v6 = vld [vmem:[#allocation5 + $0x78] sm:$0xff]   ;;  %v280_v12 = vrot.slane %v275_v8, %v65_v20 }
  0x68   :  { %984 = vmatprep.subr.bf16.mxu1 %v1123_v17 }
  0x6a   :  { %675 = vmatpush1.bf16.msra.mxu0 %v1107_v7  ;;  %v1138_v7 = vld [vmem:[#allocation5 + $0x38] sm:$0xff]  }
  0x6b   :  { %676 = vmatprep.subr.bf16.mxu0 %v1115_v10 }
  0x6e   :  { %677 = vmatpush1.bf16.msra.mxu0 %v1113_v11 }
  0x6f   :  { %678 = vmatprep.subr.bf16.mxu0 %v1119_v13 }
  0x72   :  { %679 = vmatpush1.bf16.msra.mxu0 %v1117_v14  ;;  %v284_v14 = vrot.slane %v275_v8, %v69_v22  ;;  %v967_v22 = vld [vmem:[%s1349_s6] ss:$0 sm:$0xff] }
  0x73   :  { %680 = vmatprep.subr.bf16.mxu0 %v1122_v15 }
  0x76   :  { %681 = vmatpush1.bf16.msra.mxu0 %v1120_v16 }
 0x104   :  { %v147_v25 = vpop.f32.mrb[0].mxu0 }
 0x105   :  { %v148_v26 = vadd.f32 %v147_v25, %v66_v23  ;;  %v149_v27 = vpop.f32.mrb[1].mxu0 }
 0x106   :  { %v150_v29 = vadd.f32 %v149_v27, %v70_v24  ;;  %v151_v30 = vpop.f32.mrb[2].mxu0 }
 0x107   :  { %v152_v32 = vadd.f32 %v151_v30, %v66_v23  ;;  %v153_v33 = vpop.f32.mrb[3].mxu0  ;;  %v199_v35 = vmax.f32 %v148_v26, 0.0 }
 0x108   :  { %v154_v34 = vadd.f32 %v153_v33, %v70_v24  ;;  %v200_v38 = vmax.f32 %v150_v29, 0.0 }
 0x109   :  { %v203_v36 = vmax.f32 %v152_v32, 0.0 }
 0x10a   :  { %v204_v39 = vmax.f32 %v154_v34, 0.0 }
 0x10b   :  { %v207_v41 = vpack.c.bf16 %v203_v36, %v199_v35 }
 0x10c   :  { %v190_v42 = vpop.f32.mrb[4].mxu0  ;;  %v208_v43 = vpack.c.bf16 %v204_v39, %v200_v38 }
 0x10d   :  { %v191_v45 = vadd.f32 %v190_v42, %v74_v37  ;;  %v192_v46 = vpop.f32.mrb[5].mxu0 }
 0x10e   :  { %v193_v48 = vadd.f32 %v192_v46, %v78_v40  ;;  %v194_v49 = vpop.f32.mrb[6].mxu0  ;;  %639 = vmatprep.mubr.bf16.mxu1 %v208_v43 }
 0x10f   :  { %v195_v50 = vadd.f32 %v194_v49, %v74_v37  ;;  %v196_v51 = vpop.f32.mrb[7].mxu0  ;;  %640 = vmatmul.mubr.bf16.vlgmr.msra.gmra.mrb[0].mxu1 %v207_v41  ;;  %v201_v54 = vmax.f32 %v191_v45, 0.0 }
 0x110   :  { %v197_v52 = vadd.f32 %v196_v51, %v78_v40  ;;  %985 = vmatpush3.bf16.msra.mxu1 %v1124_v44  ;;  %v202_v57 = vmax.f32 %v193_v48, 0.0 }
 0x111   :  { %v205_v55 = vmax.f32 %v195_v50, 0.0  ;;  %986 = vmatprep.subr.bf16.mxu1 %v1125_v47 }
 0x112   :  { %v206_v58 = vmax.f32 %v197_v52, 0.0 }
 0x113   :  { %v209_v59 = vpack.c.bf16 %v205_v55, %v201_v54 }
 0x114   :  { %v210_v60 = vpack.c.bf16 %v206_v58, %v202_v57  ;;  %987 = vmatpush3.bf16.msra.mxu1 %v1126_v53 }
 0x115   :  { %988 = vmatprep.subr.bf16.mxu1 %v1127_v56 }
 0x116   :  { %682 = vmatprep.mubr.bf16.mxu0 %v210_v60 }
 0x117   :  { %683 = vmatmul.mubr.bf16.vlgmr.msra.gmra.mrb[8].mxu0 %v209_v59 }
 0x118   :  { %989 = vmatpush3.bf16.msra.mxu1 %v1128_v61 }
 0x119   :  { %990 = vmatprep.subr.bf16.mxu1 %v1129_v62 }
 0x11c   :  { %991 = vmatpush3.bf16.msra.mxu1 %v1130_v63 }
 0x11d   :  { %992 = vmatprep.subr.bf16.mxu1 %v1131_v0 }
 0x120   :  { %993 = vmatpush3.bf16.msra.mxu1 %v1132_v1 }
 0x121   :  { %994 = vmatprep.subr.bf16.mxu1 %v1133_v2 }
 0x124   :  { %995 = vmatpush3.bf16.msra.mxu1 %v1134_v3 }
 0x125   :  { %996 = vmatprep.subr.bf16.mxu1 %v1135_v4 }
 0x128   :  { %997 = vmatpush3.bf16.msra.mxu1 %v1136_v5 }
 0x129   :  { %998 = vmatprep.subr.bf16.mxu1 %v1137_v6 }
 0x12c   :  { %999 = vmatpush3.bf16.msra.mxu1 %v1138_v7 }
 0x1e2   :  { %v641_v9 = vpop.f32.mrb[0].mxu1 }
 0x1e3   :  { %v643_v10 = vpop.f32.mrb[1].mxu1  ;;  %v642_v15 = vadd.f32 %v641_v9, %v280_v12 }
 0x1e4   :  { %v645_v11 = vpop.f32.mrb[2].mxu1  ;;  %v644_v16 = vadd.f32 %v643_v10, %v284_v14 }
 0x1e5   :  { %v647_v13 = vpop.f32.mrb[3].mxu1  ;;  %v646_v18 = vadd.f32 %v645_v11, %v280_v12 }
 0x1e6   :  { %v648_v24 = vadd.f32 %v647_v13, %v284_v14 }
 0x1ea   :  { %v684_v17 = vpop.f32.mrb[8].mxu0 }
 0x1eb   :  { %v685_v21 = vadd.f32 %v684_v17, %v642_v15  ;;  %v686_v23 = vpop.f32.mrb[9].mxu0 }
 0x1ec   :  { %v687_v25 = vadd.f32 %v686_v23, %v644_v16  ;;  %v688_v26 = vpop.f32.mrb[10].mxu0 }
 0x1ed   :  { %v689_v27 = vadd.f32 %v688_v26, %v646_v18  ;;  %v690_v28 = vpop.f32.mrb[11].mxu0  ;;  %v693_v30 = vmax.f32 %v685_v21, 0.0 }
 0x1ee   :  { %v691_v29 = vadd.f32 %v690_v28, %v648_v24  ;;  %v694_v32 = vmax.f32 %v687_v25, 0.0 }
 0x1ef   :  { %v695_v31 = vmax.f32 %v689_v27, 0.0 }
 0x1f0   :  { %v696_v20 = vmax.f32 %v691_v29, 0.0 }
 0x1f1   :  { %v697_v33 = vpack.c.bf16 %v695_v31, %v693_v30 }
 0x1f2   :  { %v698_v34 = vpack.c.bf16 %v696_v20, %v694_v32 }
 0x1f4   :  { %866 = vmatprep.mubr.bf16.mxu1 %v698_v34 }
 0x1f5   :  { %867 = vmatmul.mubr.bf16.vlgmr.msra.gmra.mrb[4].mxu1 %v697_v33 }
 0x2c8   :  { %v1000_v19 = vpop.f32.mrb[4].mxu1 }
 0x2c9   :  { %v1001_v35 = vpop.f32.mrb[5].mxu1 }
 0x2ca   :  { %v1002_v36 = vadd.f32 %v1001_v35, %v1000_v19  ;;  %v1003_v37 = vpop.f32.mrb[6].mxu1 }
 0x2cb   :  { %v1004_v38 = vpop.f32.mrb[7].mxu1 }
 0x2cc   :  { %v869_v39 = vadd.f32 %v1002_v36, %v967_v22  ;;  %v1005_v40 = vadd.f32 %v1004_v38, %v1003_v37 }
 0x2ce   :  { %1139 = vtanh.f32 %v869_v39  ;;  %v872_v41 = vadd.f32 %v1005_v40, %v967_v22 }
 0x2d0   :  { %1141 = vtanh.f32 %v872_v41 }
 0x2d8   :  { %v1140_v42 = vpop.eup %1139 }
 0x2d9   :  { %877 = vst [vmem:[#allocation7] sm:$0xff] %v1140_v42 }
 0x2da   :  { %v1142_v43 = vpop.eup %1141 }
 0x2db   :  { %878 = vst [vmem:[#allocation7 + $0x8] sm:$0xff] %v1142_v43 }
 0x2dc   :  { %1198 = shalt.err (!%p1195_p6)
}
 0x2dd   :  { %s1199_s20 = scalar_lea.hbm %s1350_s7, 256 }
 0x2de   :  { %p1200_p7 = scmp.ne.s32.totalorder %s1350_s7, %s1199_s20  ;;  %p1203_p8 = scmp.lt.u32.totalorder %s1199_s20, %s1350_s7 }
 0x2e0   :  { %p1205_p9 = pnand %p1203_p8, %p1200_p7 }
 0x2e2   :  { %1208 = shalt.err (!%p1205_p9)
}
 0x2e3   :  { %890 = dma.vmem_to_hbm [thread:$0]  %s885_s17, 256, %s1350_s7, [#allocation4], %s1216_s11, %s1216_s11, %s1217_s12  }
 0x2e4   :  { %1213 = dma.done.wait [#allocation4], 256  }
 0x2e5   :  { %1214 = vsyncadd [#allocation4], 4294967040 }
 0x2e6   :  { %894 = vsyncpa [#allocation3], 1 }
 0x2e7   :  { %895 = vsyncpa [#allocation6], 1 }
 0x2e8   :  { %896 = vsyncpa [#allocation4], 1 }

</bundles_post_ra>
